<compile_context>
chip_gen: v6e
topology: v6e:2x2x1
jax: 0.10.0
libtpu: 0.0.40
codegen_flags: <defaults>
</compile_context>

<pallas_src>
import jax
import jax.numpy as jnp
from jax.experimental import pallas as pl
from jax.experimental.pallas import tpu as pltpu

# ------------------------------- config -------------------------------------
B = 16            # batch
D = 256           # l_model == i_model (LayerNorm width / first Linear input)
H = 256           # hidden width fixed by the module: Linear(i_model, 256)
R = 1             # r_model (output width)
OUT_LANES = 128   # lane-dense output slab width
LN_EPS = 1e-5
NEG_SLOPE = 0.01
PACK_ROWS = 4     # row0=gamma, row1=beta, row2=b1, row3=w2[:, 0]

assert D == H, "packed-parameter layout assumes l_model == i_model == 256"


# ------------------------------ fused kernel --------------------------------
def head_kernel(x_ref, w1_ref, pack_ref, b2_ref, out_ref):
    x = x_ref[...]                          # (B, D) f32

    gamma = pack_ref[0:1, :]                # (1, D) f32
    beta  = pack_ref[1:2, :]                # (1, D) f32
    b1    = pack_ref[2:3, :]                # (1, H) f32
    w2row = pack_ref[3:4, :]                # (1, H) f32 == w2[:, 0]
    b2    = b2_ref[0, 0]                    # scalar, read from SMEM

    # LayerNorm(l_model): two-pass variance, rsqrt on the EUP.
    mu  = jnp.mean(x, axis=-1, keepdims=True)
    xc  = x - mu
    var = jnp.mean(xc * xc, axis=-1, keepdims=True)
    xn  = xc * jax.lax.rsqrt(var + LN_EPS)
    xn  = xn * gamma + beta

    # Linear(i_model, 256): bf16 operands into the MXU, f32 accumulate.
    h = jnp.dot(xn.astype(jnp.bfloat16), w1_ref[...],
                preferred_element_type=jnp.float32) + b1
    # LeakyReLU(0.01): mul + max on the VPU.
    h = jnp.maximum(h, NEG_SLOPE * h)

    # TODO(synk): training-mode stochastic Dropout not implemented (identity in eval).

    # Linear(256, 1): VPU multiply + lane reduction (avoids an N=1 MXU matmul).
    y = jnp.sum(h * w2row, axis=-1, keepdims=True) + b2          # (B, 1)

    # Lane-dense store: broadcast across 128 lanes; wrapper slices [:, :R].
    out_ref[...] = jnp.broadcast_to(y, out_ref.shape)


# ------------------------------ wrapper --------------------------------------
def classification_head(x, w1_bf16, pack, b2):
    bsz = x.shape[0]
    out = pl.pallas_call(
        head_kernel,
        out_shape=jax.ShapeDtypeStruct((bsz, OUT_LANES), jnp.float32),
        grid_spec=pltpu.PrefetchScalarGridSpec(
            num_scalar_prefetch=0,
            grid=(1,),                                             # single step
            in_specs=[
                pl.BlockSpec((bsz, D), lambda i: (0, 0)),          # whole batch
                pl.BlockSpec((D, H), lambda i: (0, 0)),            # W1 (bf16)
                pl.BlockSpec((PACK_ROWS, H), lambda i: (0, 0)),    # packed params
                pl.BlockSpec(memory_space=pltpu.MemorySpace.SMEM), # b2 scalar
            ],
            out_specs=pl.BlockSpec((bsz, OUT_LANES), lambda i: (0, 0)),
        ),
        compiler_params=pltpu.CompilerParams(
            dimension_semantics=("arbitrary",)),
    )(x, w1_bf16, pack, b2)
    return out[:, :R]


# ------------------------------ params ---------------------------------------
def init_params(key):
    k1, k2, k3, k4 = jax.random.split(key, 4)
    gamma = jnp.ones((D,), jnp.float32)
    beta  = jnp.zeros((D,), jnp.float32)
    w1 = 0.05 * jax.random.normal(k1, (D, H), jnp.float32)
    b1 = 0.05 * jax.random.normal(k2, (H,), jnp.float32)
    w2 = 0.05 * jax.random.normal(k3, (H, R), jnp.float32)
    b2 = 0.05 * jax.random.normal(k4, (R,), jnp.float32)

    pack = jnp.zeros((PACK_ROWS, H), jnp.float32)
    pack = pack.at[0, :D].set(gamma)
    pack = pack.at[1, :D].set(beta)
    pack = pack.at[2, :].set(b1)
    pack = pack.at[3, :].set(w2[:, 0])

    kernel_params = {
        "w1_bf16": w1.astype(jnp.bfloat16),   # MXU operand shipped as bf16
        "pack": pack,
        "b2": b2.reshape(1, 1),               # SMEM scalar
    }
    return kernel_params, (gamma, beta, w1, b1, w2, b2)


def reference(x, raw):
    gamma, beta, w1, b1, w2, b2 = raw
    mu = jnp.mean(x, axis=-1, keepdims=True)
    var = jnp.mean((x - mu) ** 2, axis=-1, keepdims=True)
    xn = (x - mu) / jnp.sqrt(var + LN_EPS) * gamma + beta
    h = xn @ w1 + b1
    h = jnp.where(h > 0, h, NEG_SLOPE * h)
    return h @ w2 + b2


# -------------------------------- main ----------------------------------------
if __name__ == "__main__":
    key = jax.random.PRNGKey(0)
    kx, kp = jax.random.split(key)

    x = jax.random.normal(kx, (B, D), jnp.float32)
    kernel_params, raw = init_params(kp)

    y = classification_head(x, kernel_params["w1_bf16"],
                            kernel_params["pack"], kernel_params["b2"])
    y = jax.block_until_ready(y)
    assert y.shape == (B, R) and y.dtype == jnp.float32

    # f32 reference; tolerance covers the bf16 rounding of the MXU operands.
    y_ref = reference(x, raw)
    assert float(jnp.max(jnp.abs(y - y_ref))) < 2e-2

    print("KERNEL_OK")
</pallas_src>

<mosaic_0001>
module attributes {stable_mosaic.version = 11 : i64} {
  func.func @head_kernel(%arg0: i32, %arg1: memref<16x256xf32, #tpu.memory_space<vmem>>, %arg2: memref<256x256xbf16, #tpu.memory_space<vmem>>, %arg3: memref<4x256xf32, #tpu.memory_space<vmem>>, %arg4: memref<1x1xf32, #tpu.memory_space<smem>>, %arg5: memref<16x128xf32, #tpu.memory_space<vmem>>) attributes {dimension_semantics = [#tpu.dimension_semantics<arbitrary>], iteration_bounds = array<i64: 1>, scalar_prefetch = 0 : i64, scratch_operands = 0 : i64, tpu.core_type = #tpu.core_type<tc>, window_params = [{pipeline_mode = #tpu.pipeline_mode<synchronous>, transform_indices = @transform_0, window_bounds = array<i64: 16, 256>}, {pipeline_mode = #tpu.pipeline_mode<synchronous>, transform_indices = @transform_1, window_bounds = array<i64: 256, 256>}, {pipeline_mode = #tpu.pipeline_mode<synchronous>, transform_indices = @transform_2, window_bounds = array<i64: 4, 256>}, {transform_indices = @transform_3, window_bounds = array<i64: 1, 1>}, {pipeline_mode = #tpu.pipeline_mode<synchronous>, transform_indices = @transform_4, window_bounds = array<i64: 16, 128>}]} {
    %c0 = arith.constant 0 : index
    %c0_0 = arith.constant 0 : index
    %0 = vector.load %arg1[%c0, %c0_0] : memref<16x256xf32, #tpu.memory_space<vmem>>, vector<16x256xf32>
    %c0_1 = arith.constant 0 : index
    %c0_2 = arith.constant 0 : index
    %1 = vector.load %arg3[%c0_1, %c0_2] : memref<4x256xf32, #tpu.memory_space<vmem>>, vector<1x256xf32>
    %c1 = arith.constant 1 : index
    %c0_3 = arith.constant 0 : index
    %2 = vector.load %arg3[%c1, %c0_3] : memref<4x256xf32, #tpu.memory_space<vmem>>, vector<1x256xf32>
    %c2 = arith.constant 2 : index
    %c0_4 = arith.constant 0 : index
    %3 = vector.load %arg3[%c2, %c0_4] : memref<4x256xf32, #tpu.memory_space<vmem>>, vector<1x256xf32>
    %c3 = arith.constant 3 : index
    %c0_5 = arith.constant 0 : index
    %4 = vector.load %arg3[%c3, %c0_5] : memref<4x256xf32, #tpu.memory_space<vmem>>, vector<1x256xf32>
    %c0_6 = arith.constant 0 : index
    %c0_7 = arith.constant 0 : index
    %5 = memref.load %arg4[%c0_6, %c0_7] : memref<1x1xf32, #tpu.memory_space<smem>>
    %cst = arith.constant dense<0.000000e+00> : vector<16xf32>
    %6 = vector.multi_reduction <add>, %0, %cst [1] : vector<16x256xf32> to vector<16xf32>
    %7 = vector.shape_cast %6 : vector<16xf32> to vector<16x1xf32>
    %cst_8 = arith.constant 2.560000e+02 : f32
    %8 = vector.broadcast %cst_8 : f32 to vector<16x1xf32>
    %9 = arith.divf %7, %8 : vector<16x1xf32>
    %10 = vector.broadcast %9 : vector<16x1xf32> to vector<16x256xf32>
    %11 = arith.subf %0, %10 : vector<16x256xf32>
    %12 = arith.mulf %11, %11 : vector<16x256xf32>
    %cst_9 = arith.constant dense<0.000000e+00> : vector<16xf32>
    %13 = vector.multi_reduction <add>, %12, %cst_9 [1] : vector<16x256xf32> to vector<16xf32>
    %14 = vector.shape_cast %13 : vector<16xf32> to vector<16x1xf32>
    %cst_10 = arith.constant 2.560000e+02 : f32
    %15 = vector.broadcast %cst_10 : f32 to vector<16x1xf32>
    %16 = arith.divf %14, %15 : vector<16x1xf32>
    %cst_11 = arith.constant 9.99999974E-6 : f32
    %17 = vector.broadcast %cst_11 : f32 to vector<16x1xf32>
    %18 = arith.addf %16, %17 : vector<16x1xf32>
    %19 = math.rsqrt %18 : vector<16x1xf32>
    %20 = vector.broadcast %19 : vector<16x1xf32> to vector<16x256xf32>
    %21 = arith.mulf %11, %20 : vector<16x256xf32>
    %22 = vector.broadcast %1 : vector<1x256xf32> to vector<16x256xf32>
    %23 = arith.mulf %21, %22 : vector<16x256xf32>
    %24 = vector.broadcast %2 : vector<1x256xf32> to vector<16x256xf32>
    %25 = arith.addf %23, %24 : vector<16x256xf32>
    %26 = arith.truncf %25 : vector<16x256xf32> to vector<16x256xbf16>
    %c0_12 = arith.constant 0 : index
    %c0_13 = arith.constant 0 : index
    %27 = vector.load %arg2[%c0_12, %c0_13] : memref<256x256xbf16, #tpu.memory_space<vmem>>, vector<256x256xbf16>
    %cst_14 = arith.constant dense<0.000000e+00> : vector<16x256xf32>
    %28 = tpu.matmul %26, %27, %cst_14 {dimension_numbers = #tpu.dot_dimension_numbers<[1], [0], [0], [1], [0, 0, 1, 1], [], []>} : vector<16x256xbf16>, vector<256x256xbf16>, vector<16x256xf32> -> vector<16x256xf32>
    %29 = vector.broadcast %3 : vector<1x256xf32> to vector<16x256xf32>
    %30 = arith.addf %28, %29 : vector<16x256xf32>
    %cst_15 = arith.constant 0.00999999977 : f32
    %31 = vector.broadcast %cst_15 : f32 to vector<16x256xf32>
    %32 = arith.mulf %31, %30 : vector<16x256xf32>
    %33 = arith.maximumf %30, %32 : vector<16x256xf32>
    %34 = vector.broadcast %4 : vector<1x256xf32> to vector<16x256xf32>
    %35 = arith.mulf %33, %34 : vector<16x256xf32>
    %cst_16 = arith.constant dense<0.000000e+00> : vector<16xf32>
    %36 = vector.multi_reduction <add>, %35, %cst_16 [1] : vector<16x256xf32> to vector<16xf32>
    %37 = vector.shape_cast %36 : vector<16xf32> to vector<16x1xf32>
    %38 = vector.broadcast %5 : f32 to vector<16x1xf32>
    %39 = arith.addf %37, %38 : vector<16x1xf32>
    %40 = vector.shape_cast %39 : vector<16x1xf32> to vector<16x1xf32>
    %41 = vector.broadcast %40 : vector<16x1xf32> to vector<16x128xf32>
    %c0_17 = arith.constant 0 : index
    %c0_18 = arith.constant 0 : index
    %42 = vector.load %arg5[%c0_17, %c0_18] : memref<16x128xf32, #tpu.memory_space<vmem>>, vector<16x128xf32>
    tpu.vector_store %arg5[%c0_17, %c0_18], %41 {strides = array<i32>} : memref<16x128xf32, #tpu.memory_space<vmem>>, vector<16x128xf32>,
    return
  }
  func.func @transform_0(%arg0: i32) -> (i32, i32) {
    %c0_i32 = arith.constant 0 : i32
    %c0_i32_0 = arith.constant 0 : i32
    %c0_i32_1 = arith.constant 0 : i32
    return %c0_i32, %c0_i32_0 : i32, i32
  }
  func.func @transform_1(%arg0: i32) -> (i32, i32) {
    %c0_i32 = arith.constant 0 : i32
    %c0_i32_0 = arith.constant 0 : i32
    %c0_i32_1 = arith.constant 0 : i32
    return %c0_i32, %c0_i32_0 : i32, i32
  }
  func.func @transform_2(%arg0: i32) -> (i32, i32) {
    %c0_i32 = arith.constant 0 : i32
    %c0_i32_0 = arith.constant 0 : i32
    %c0_i32_1 = arith.constant 0 : i32
    return %c0_i32, %c0_i32_0 : i32, i32
  }
  func.func @transform_3(%arg0: i32) -> (i32, i32) {
    %c0_i32 = arith.constant 0 : i32
    %c0_i32_0 = arith.constant 0 : i32
    %c0_i32_1 = arith.constant 0 : i32
    return %c0_i32, %c0_i32_0 : i32, i32
  }
  func.func @transform_4(%arg0: i32) -> (i32, i32) {
    %c0_i32 = arith.constant 0 : i32
    %c0_i32_0 = arith.constant 0 : i32
    %c0_i32_1 = arith.constant 0 : i32
    return %c0_i32, %c0_i32_0 : i32, i32
  }
}

</mosaic_0001>

<bundles_post_ra>
// kernel: tpu_custom_call.1
= control target key start
LH: loop header
LB: loop body
LE: loop exit
PB: predicated region body
PF: predicated region fallthrough
CT: control target
= control target key end

     0   :  { %10 = vsyncpa [#allocation4], 0  ;;  %s665_s0 = inlined_call_operand.hbm [shape: f32[16,256], index: 0, kind: input, shape index: {}]   ;;  %s666_s1 = inlined_call_operand.hbm [shape: bf16[256,256], index: 1, kind: input, shape index: {}]   ;;  %s667_s2 = inlined_call_operand.hbm [shape: f32[4,256], index: 2, kind: input, shape index: {}]   ;;  %s668_s3 = inlined_call_operand.<no memory space> [shape: f32[1,1], index: 3, kind: input, shape index: {}]   ;;  %s669_s4 = inlined_call_operand.hbm [shape: f32[16,128], index: 4, kind: output, shape index: {}]  }
   0x1   :  { %11 = vsyncpa [#allocation7], 0 }
   0x2   :  { %12 = vsyncpa [#allocation5], 0  ;;  %s611_s15 = smov [#allocation6]  }
   0x3   :  { %s30_s16 = sshll.u32 %s611_s15, 4  ;;  %s31_s16 = int_to_ptr.vmem [resolvable:$true] %s30_s16 }
   0x4   :  { %s533_s17 = scalar_lea.vmem %s31_s16, 4096  ;;  %p538_p1 = scmp.lt.s32.totalorder %s31_s16, %s31_s16 }
   0x5   :  { %p534_p0 = scmp.ne.s32.totalorder %s31_s16, %s533_s17  ;;  %p539_p2 = scmp.lt.s32.totalorder %s533_s17, %s533_s17 }
   0x7   :  { %p540_p3 = por %p539_p2, %p538_p1 }
   0x9   :  { %p541_p4 = pnand %p540_p3, %p534_p0 }
   0xb   :  { %544 = shalt.err (!%p541_p4)
}
   0xc   :  { %s612_s18 = smov 128   ;;  %s613_s19 = smov 8  }
   0xd   :  { %36 = dma.hbm_to_vmem [thread:$0]  %s666_s1, 4096, %s31_s16, [#allocation7], %s612_s18, %s612_s18, %s613_s19  }
   0xe   :  { %s614_s22 = smov [#allocation3]  }
   0xf   :  { %s18_s23 = sshll.u32 %s614_s22, 4  ;;  %s19_s23 = int_to_ptr.vmem [resolvable:$true] %s18_s23 }
  0x10   :  { %s553_s24 = scalar_lea.vmem %s19_s23, 512  ;;  %p558_p6 = scmp.lt.s32.totalorder %s19_s23, %s19_s23 }
  0x11   :  { %p554_p5 = scmp.ne.s32.totalorder %s19_s23, %s553_s24  ;;  %p559_p7 = scmp.lt.s32.totalorder %s553_s24, %s553_s24 }
  0x13   :  { %p560_p8 = por %p559_p7, %p558_p6 }
  0x15   :  { %p561_p9 = pnand %p560_p8, %p554_p5 }
  0x17   :  { %564 = shalt.err (!%p561_p9)
}
  0x18   :  { %s615_s25 = smov 256   ;;  %s616_s26 = smov 16  }
  0x19   :  { %24 = dma.hbm_to_vmem [thread:$0]  %s665_s0, 512, %s19_s23, [#allocation4], %s615_s25, %s615_s25, %s616_s26  }
  0x1a   :  { %s617_s29 = smov [#allocation8]  }
  0x1b   :  { %s43_s30 = sshll.u32 %s617_s29, 4  ;;  %s44_s30 = int_to_ptr.vmem [resolvable:$true] %s43_s30 }
  0x1c   :  { %s573_s1 = scalar_lea.vmem %s44_s30, 128  ;;  %p578_p11 = scmp.lt.s32.totalorder %s44_s30, %s44_s30 }
  0x1d   :  { %p574_p10 = scmp.ne.s32.totalorder %s44_s30, %s573_s1  ;;  %p579_p12 = scmp.lt.s32.totalorder %s573_s1, %s573_s1 }
  0x1f   :  { %p580_p13 = por %p579_p12, %p578_p11 }
  0x21   :  { %p581_p0 = pnand %p580_p13, %p574_p10 }
  0x23   :  { %584 = shalt.err (!%p581_p0)
}
  0x24   :  { %46 = dma.hbm_to_vmem [thread:$0]  %s667_s2, 128, %s44_s30, [#allocation7]  }
  0x25   :  { %605 = dma.done.wait [#allocation4], 512  }
  0x26   :  { %606 = vsyncadd [#allocation4], 4294966784 }
  0x27   :  { %607 = dma.done.wait [#allocation7], 4224  }
  0x28   :  { %608 = vsyncadd [#allocation7], 4294963072  ;;  %v58_v0 = vld [vmem:[#allocation3] sm:$0xff]  ;;  %v59_v1 = vld [vmem:[#allocation3 + $0x8] sm:$0xff]  ;;  %v104_v58 = vlaneseq  ;;  %s618_s7 = smov [#allocation9]  }
  0x29   :  { %v60_v2 = vld [vmem:[#allocation3 + $0x10] sm:$0xff]  ;;  %v70_v3 = vadd.f32 %v59_v1, %v58_v0  ;;  %v61_v4 = vld [vmem:[#allocation3 + $0x18] sm:$0xff]  ;;  %v476_v8 = vld [vmem:[#allocation6 + $0x64] ss:$8 sps:$4 sm:$0xff]   ;;  %s420_s8 = sshll.u32 %s618_s7, 4  ;;  %s421_s8 = int_to_ptr.vmem [resolvable:$true] %s420_s8 }
  0x2a   :  { %v73_v5 = vadd.f32 %v61_v4, %v60_v2  ;;  %v473_v6 = vld [vmem:[#allocation6 + $0x74] ss:$8 sps:$4 sm:$0xff]   ;;  %v475_v7 = vld [vmem:[#allocation6 + $0x70] ss:$8 sps:$4 sm:$0xff]   ;;  %v478_v9 = vld [vmem:[#allocation6 + $0x60] ss:$8 sps:$4 sm:$0xff]   ;;  %p590_p2 = scmp.lt.s32.totalorder %s421_s8, %s421_s8 }
  0x2b   :  { %71 = vadd.xlane.f32.xlu0 %v70_v3  ;;  %338 = vmatprep.subr.bf16.mxu0 %v473_v6  ;;  %v479_v10 = vld [vmem:[#allocation6 + $0x54] ss:$8 sps:$4 sm:$0xff]   ;;  %v481_v11 = vld [vmem:[#allocation6 + $0x50] ss:$8 sps:$4 sm:$0xff]   ;;  %v482_v12 = vld [vmem:[#allocation6 + $0x44] ss:$8 sps:$4 sm:$0xff]  }
  0x2c   :  { %339 = vmatpush1.bf16.msra.mxu0 %v475_v7  ;;  %v484_v13 = vld [vmem:[#allocation6 + $0x40] ss:$8 sps:$4 sm:$0xff]   ;;  %v485_v14 = vld [vmem:[#allocation6 + $0x34] ss:$8 sps:$4 sm:$0xff]   ;;  %v487_v15 = vld [vmem:[#allocation6 + $0x30] ss:$8 sps:$4 sm:$0xff]  }
  0x2d   :  { %340 = vmatprep.subr.bf16.mxu0 %v476_v8  ;;  %v488_v16 = vld [vmem:[#allocation6 + $0x24] ss:$8 sps:$4 sm:$0xff]   ;;  %v490_v17 = vld [vmem:[#allocation6 + $0x20] ss:$8 sps:$4 sm:$0xff]   ;;  %v491_v18 = vld [vmem:[#allocation6 + $0x14] ss:$8 sps:$4 sm:$0xff]  }
  0x2e   :  { %v493_v19 = vld [vmem:[#allocation6 + $0x10] ss:$8 sps:$4 sm:$0xff]   ;;  %v494_v20 = vld [vmem:[#allocation6 + $0x4] ss:$8 sps:$4 sm:$0xff]   ;;  %v496_v21 = vld [vmem:[#allocation6] ss:$8 sps:$4 sm:$0xff]  }
  0x2f   :  { %74 = vadd.xlane.f32.xlu0 %v73_v5  ;;  %v497_v22 = vld [vmem:[#allocation6 + $0xf4] ss:$8 sps:$4 sm:$0xff]   ;;  %v499_v37 = vld [vmem:[#allocation6 + $0xf0] ss:$8 sps:$4 sm:$0xff]   ;;  %v500_v38 = vld [vmem:[#allocation6 + $0xe4] ss:$8 sps:$4 sm:$0xff]  }
  0x30   :  { %341 = vmatpush1.bf16.msra.mxu0 %v478_v9  ;;  %v502_v39 = vld [vmem:[#allocation6 + $0xe0] ss:$8 sps:$4 sm:$0xff]   ;;  %v503_v40 = vld [vmem:[#allocation6 + $0xd4] ss:$8 sps:$4 sm:$0xff]   ;;  %v505_v41 = vld [vmem:[#allocation6 + $0xd0] ss:$8 sps:$4 sm:$0xff]  }
  0x31   :  { %342 = vmatprep.subr.bf16.mxu0 %v479_v10  ;;  %v506_v42 = vld [vmem:[#allocation6 + $0xc4] ss:$8 sps:$4 sm:$0xff]   ;;  %v508_v43 = vld [vmem:[#allocation6 + $0xc0] ss:$8 sps:$4 sm:$0xff]   ;;  %v509_v44 = vld [vmem:[#allocation6 + $0xb4] ss:$8 sps:$4 sm:$0xff]  }
  0x32   :  { %v511_v45 = vld [vmem:[#allocation6 + $0xb0] ss:$8 sps:$4 sm:$0xff]   ;;  %v512_v46 = vld [vmem:[#allocation6 + $0xa4] ss:$8 sps:$4 sm:$0xff]   ;;  %v514_v47 = vld [vmem:[#allocation6 + $0xa0] ss:$8 sps:$4 sm:$0xff]  }
  0x33   :  { %v515_v48 = vld [vmem:[#allocation6 + $0x94] ss:$8 sps:$4 sm:$0xff]   ;;  %v517_v49 = vld [vmem:[#allocation6 + $0x90] ss:$8 sps:$4 sm:$0xff]   ;;  %v518_v50 = vld [vmem:[#allocation6 + $0x84] ss:$8 sps:$4 sm:$0xff]  }
  0x34   :  { %343 = vmatpush1.bf16.msra.mxu0 %v481_v11  ;;  %v520_v51 = vld [vmem:[#allocation6 + $0x80] ss:$8 sps:$4 sm:$0xff]   ;;  %v105_v59 = vshrl.u32 %v104_v58, 7  ;;  %s585_s9 = scalar_lea.vmem %s421_s8, 256 }
  0x35   :  { %344 = vmatprep.subr.bf16.mxu0 %v482_v12  ;;  %v62_v62 = vld [vmem:[#allocation8] ss:$4 sm:$0x3]  ;;  %p586_p1 = scmp.ne.s32.totalorder %s421_s8, %s585_s9  ;;  %p591_p3 = scmp.lt.s32.totalorder %s585_s9, %s585_s9 }
  0x36   :  { %v106_v60 = vsub.s32 0, %v105_v59  ;;  %v110_v61 = vsub.s32 1, %v105_v59 }
  0x37   :  { %p592_p4 = por %p591_p3, %p590_p2 }
  0x38   :  { %345 = vmatpush1.bf16.msra.mxu0 %v484_v13  ;;  %v111_v3 = vrot.slane %v62_v62, %v110_v61 }
  0x39   :  { %346 = vmatprep.subr.bf16.mxu0 %v485_v14  ;;  %p593_p5 = pnand %p592_p4, %p586_p1 }
  0x3c   :  { %347 = vmatpush1.bf16.msra.mxu0 %v487_v15 }
  0x3d   :  { %348 = vmatprep.subr.bf16.mxu0 %v488_v16 }
  0x40   :  { %349 = vmatpush1.bf16.msra.mxu0 %v490_v17 }
  0x41   :  { %350 = vmatprep.subr.bf16.mxu0 %v491_v18 }
  0x44   :  { %351 = vmatpush1.bf16.msra.mxu0 %v493_v19 }
  0x45   :  { %352 = vmatprep.subr.bf16.mxu0 %v494_v20  ;;  %v66_v20 = vld [vmem:[#allocation8 + $0x2] ss:$4 sm:$0x3] }
  0x48   :  { %353 = vmatpush1.bf16.msra.mxu0 %v496_v21  ;;  %v171_v21 = vrot.slane %v66_v20, %v106_v60 }
  0x49   :  { %354 = vmatprep.subr.bf16.mxu0 %v497_v22  ;;  %v175_v22 = vrot.slane %v66_v20, %v110_v61 }
  0x4c   :  { %355 = vmatpush2.bf16.msra.mxu0 %v499_v37 }
  0x4d   :  { %356 = vmatprep.subr.bf16.mxu0 %v500_v38 }
  0x50   :  { %357 = vmatpush2.bf16.msra.mxu0 %v502_v39 }
  0x51   :  { %358 = vmatprep.subr.bf16.mxu0 %v503_v40 }
  0x54   :  { %359 = vmatpush2.bf16.msra.mxu0 %v505_v41 }
  0x55   :  { %360 = vmatprep.subr.bf16.mxu0 %v506_v42 }
  0x58   :  { %361 = vmatpush2.bf16.msra.mxu0 %v508_v43 }
  0x59   :  { %362 = vmatprep.subr.bf16.mxu0 %v509_v44 }
  0x5c   :  { %363 = vmatpush2.bf16.msra.mxu0 %v511_v45 }
  0x5d   :  { %364 = vmatprep.subr.bf16.mxu0 %v512_v46 }
  0x60   :  { %365 = vmatpush2.bf16.msra.mxu0 %v514_v47 }
  0x61   :  { %366 = vmatprep.subr.bf16.mxu0 %v515_v48  ;;  %v410_v48 = vstv %s668_s3 }
  0x64   :  { %367 = vmatpush2.bf16.msra.mxu0 %v517_v49 }
  0x65   :  { %368 = vmatprep.subr.bf16.mxu0 %v518_v50 }
  0x68   :  { %369 = vmatpush2.bf16.msra.mxu0 %v520_v51 }
  0xb4   :  { %v72_v23 = vpop.xlane.xlu0 %71 }
  0xb5   :  { %v77_v24 = vmul.f32 0.00390625, %v72_v23 }
  0xb7   :  { %v79_v25 = vsub.f32 %v58_v0, %v77_v24  ;;  %v80_v26 = vsub.f32 %v59_v1, %v77_v24  ;;  %v64_v0 = vld [vmem:[#allocation8 + $0x1] ss:$4 sm:$0x3] }
  0xb8   :  { %v75_v27 = vpop.xlane.xlu0 %74  ;;  %v122_v6 = vrot.slane %v64_v0, %v106_v60  ;;  %v126_v7 = vrot.slane %v64_v0, %v110_v61 }
  0xb9   :  { %v78_v28 = vmul.f32 0.00390625, %v75_v27  ;;  %v83_v29 = vmul.f32 %v79_v25, %v79_v25  ;;  %v84_v30 = vmul.f32 %v80_v26, %v80_v26 }
  0xbb   :  { %v81_v31 = vsub.f32 %v60_v2, %v78_v28  ;;  %v82_v32 = vsub.f32 %v61_v4, %v78_v28  ;;  %v87_v33 = vadd.f32 %v84_v30, %v83_v29  ;;  %v107_v2 = vrot.slane %v62_v62, %v106_v60 }
  0xbd   :  { %88 = vadd.xlane.f32.xlu1 %v87_v33  ;;  %v85_v34 = vmul.f32 %v81_v31, %v81_v31  ;;  %v86_v35 = vmul.f32 %v82_v32, %v82_v32 }
  0xbf   :  { %v90_v36 = vadd.f32 %v86_v35, %v85_v34 }
  0xc1   :  { %91 = vadd.xlane.f32.xlu1 %v90_v36 }
 0x146   :  { %v89_v52 = vpop.xlane.xlu1 %88 }
 0x147   :  { %v93_v53 = vmul.f32 0.00390625, %v89_v52 }
 0x149   :  { %v95_v54 = vadd.f32 1e-05, %v93_v53 }
 0x14a   :  { %v92_v55 = vpop.xlane.xlu1 %91 }
 0x14b   :  { %521 = vrsqrt.f32 %v95_v54  ;;  %v94_v56 = vmul.f32 0.00390625, %v92_v55 }
 0x14d   :  { %v96_v57 = vadd.f32 1e-05, %v94_v56 }
 0x14f   :  { %523 = vrsqrt.f32 %v96_v57 }
 0x158   :  { %v522_v63 = vpop.eup %521 }
 0x159   :  { %v100_v1 = vmul.f32 %v522_v63, %v80_v26  ;;  %v99_v4 = vmul.f32 %v522_v63, %v79_v25  ;;  %v68_v25 = vld [vmem:[#allocation8 + $0x3] ss:$4 sm:$0x3] }
 0x15a   :  { %v393_v30 = vrot.slane %v68_v25, %v106_v60  ;;  %v397_v34 = vrot.slane %v68_v25, %v110_v61 }
 0x15b   :  { %v115_v9 = vmul.f32 %v111_v3, %v100_v1  ;;  %v114_v11 = vmul.f32 %v107_v2, %v99_v4 }
 0x15c   :  { %v524_v5 = vpop.eup %523 }
 0x15d   :  { %v102_v8 = vmul.f32 %v524_v5, %v82_v32  ;;  %v101_v10 = vmul.f32 %v524_v5, %v81_v31  ;;  %v130_v14 = vadd.f32 %v126_v7, %v115_v9  ;;  %v129_v16 = vadd.f32 %v122_v6, %v114_v11 }
 0x15f   :  { %v117_v12 = vmul.f32 %v111_v3, %v102_v8  ;;  %v116_v13 = vmul.f32 %v107_v2, %v101_v10 }
 0x161   :  { %v132_v15 = vadd.f32 %v126_v7, %v117_v12  ;;  %v131_v17 = vadd.f32 %v122_v6, %v116_v13 }
 0x163   :  { %v134_v18 = vpack.c.bf16 %v132_v15, %v130_v14  ;;  %v133_v19 = vpack.c.bf16 %v131_v17, %v129_v16 }
 0x165   :  { %370 = vmatprep.mubr.bf16.mxu0 %v134_v18 }
 0x166   :  { %371 = vmatmul.mubr.bf16.vlgmr.msra.gmra.mxu0 %v133_v19 }
 0x226   :  { %v372_v23 = vpop.f32.mrf.mxu0 }
 0x227   :  { %v373_v24 = vadd.f32 %v372_v23, %v171_v21 }
 0x228   :  { %v374_v26 = vpop.f32.mrf.mxu0 }
 0x229   :  { %v381_v27 = vmul.f32 0.01, %v373_v24  ;;  %v375_v28 = vadd.f32 %v374_v26, %v175_v22 }
 0x22a   :  { %v376_v29 = vpop.f32.mrf.mxu0 }
 0x22b   :  { %v385_v31 = vmax.f32 %v373_v24, %v381_v27  ;;  %v382_v32 = vmul.f32 0.01, %v375_v28  ;;  %v377_v33 = vadd.f32 %v376_v29, %v171_v21 }
 0x22c   :  { %v378_v35 = vpop.f32.mrf.mxu0 }
 0x22d   :  { %v386_v36 = vmax.f32 %v375_v28, %v382_v32  ;;  %v383_v37 = vmul.f32 0.01, %v377_v33  ;;  %v379_v38 = vadd.f32 %v378_v35, %v175_v22  ;;  %v400_v41 = vmul.f32 %v393_v30, %v385_v31 }
 0x22f   :  { %v387_v39 = vmax.f32 %v377_v33, %v383_v37  ;;  %v384_v40 = vmul.f32 0.01, %v379_v38  ;;  %v401_v42 = vmul.f32 %v397_v34, %v386_v36 }
 0x231   :  { %v388_v43 = vmax.f32 %v379_v38, %v384_v40  ;;  %v404_v44 = vadd.f32 %v401_v42, %v400_v41  ;;  %v402_v45 = vmul.f32 %v393_v30, %v387_v39 }
 0x233   :  { %405 = vadd.xlane.f32.xlu0 %v404_v44  ;;  %v403_v46 = vmul.f32 %v397_v34, %v388_v43 }
 0x235   :  { %v407_v47 = vadd.f32 %v403_v46, %v402_v45 }
 0x237   :  { %408 = vadd.xlane.f32.xlu1 %v407_v47 }
 0x2bc   :  { %v406_v49 = vpop.xlane.xlu0 %405 }
 0x2bd   :  { %v411_v50 = vadd.f32 %v410_v48, %v406_v49 }
 0x2bf   :  { %413 = vst [vmem:[#allocation9] sm:$0xff] %v411_v50 }
 0x2c0   :  { %v409_v51 = vpop.xlane.xlu1 %408 }
 0x2c1   :  { %v412_v52 = vadd.f32 %v410_v48, %v409_v51 }
 0x2c3   :  { %414 = vst [vmem:[#allocation9 + $0x8] sm:$0xff] %v412_v52 }
 0x2c4   :  { %596 = shalt.err (!%p593_p5)
}
 0x2c5   :  { %426 = dma.vmem_to_hbm [thread:$0]  %s421_s8, 256, %s669_s4, [#allocation5], %s612_s18, %s612_s18, %s613_s19  }
 0x2c6   :  { %609 = dma.done.wait [#allocation5], 256  }
 0x2c7   :  { %610 = vsyncadd [#allocation5], 4294967040 }
 0x2c8   :  { %430 = vsyncpa [#allocation4], 1 }
 0x2c9   :  { %431 = vsyncpa [#allocation7], 1 }
 0x2ca   :  { %432 = vsyncpa [#allocation5], 1 }

</bundles_post_ra>
